<compile_context>
chip_gen: v5e
topology: v5e:2x2
jax: 0.10.0
libtpu: 0.0.40
codegen_flags: <defaults>
</compile_context>

<pallas_src>
import jax
import jax.numpy as jnp
from jax import lax
from jax.experimental import pallas as pl
from jax.experimental.pallas import tpu as pltpu


def _nn_actor_kernel(x_ref, w1_ref, w2_ref, w3_ref, b_ref, out_ref):
    """Fused NNActor forward on one batch tile.

    x_ref   : [TB, in]       bf16
    w1_ref  : [in, H1]       bf16  shared_input_layer
    w2_ref  : [H1, 2*H2]     bf16  hidden_layer_mu ‖ hidden_layer_var (fused)
    w3_ref  : [2*H2, 2*O]    bf16  block-diag(output_layer_mu, output_layer_var)
    b_ref   : [3, W]         f32   row0=b_in, row1=b_hmu‖b_hvar, row2=b_omu‖b_ovar (zero-padded)
    out_ref : [TB, 2*O]      f32   cols[:O]=tanh(mu logits), cols[O:]=sigmoid(var logits)
    """
    h1 = w1_ref.shape[1]
    h2c = w2_ref.shape[1]
    oc = w3_ref.shape[1]

    x = x_ref[...]

    # Shared layer: MXU in bf16, bias add + ReLU in f32.
    l1 = jnp.dot(x, w1_ref[...], preferred_element_type=jnp.float32)
    l1 = jnp.maximum(l1 + b_ref[0:1, :h1], 0.0)

    # Fused mu/var hidden layer.
    l2 = jnp.dot(l1.astype(w2_ref.dtype), w2_ref[...],
                 preferred_element_type=jnp.float32)
    l2 = jnp.maximum(l2 + b_ref[1:2, :h2c], 0.0)

    # Fused (block-diagonal) output heads.
    z = jnp.dot(l2.astype(w3_ref.dtype), w3_ref[...],
                preferred_element_type=jnp.float32)
    z = z + b_ref[2:3, :oc]

    col = lax.broadcasted_iota(jnp.int32, z.shape, 1)
    out_ref[...] = jnp.where(col < (oc // 2), jnp.tanh(z), jax.nn.sigmoid(z))


def pack_actor_params(params, compute_dtype=jnp.bfloat16):
    """Fuse / pack PyTorch-style per-layer params into the kernel's 4 arrays."""
    h1 = params["w_in"].shape[1]
    h2, o = params["w_omu"].shape

    w1 = params["w_in"].astype(compute_dtype)                                  # [in, H1]
    w2 = jnp.concatenate([params["w_hmu"], params["w_hvar"]], axis=1)          # [H1, 2*H2]
    w2 = w2.astype(compute_dtype)
    w3 = jnp.zeros((2 * h2, 2 * o), jnp.float32)                               # block-diag
    w3 = w3.at[:h2, :o].set(params["w_omu"]).at[h2:, o:].set(params["w_ovar"])
    w3 = w3.astype(compute_dtype)

    width = max(h1, 2 * h2, 2 * o)
    b = jnp.zeros((3, width), jnp.float32)
    b = b.at[0, :h1].set(params["b_in"][0])
    b = b.at[1, :h2].set(params["b_hmu"][0]).at[1, h2:2 * h2].set(params["b_hvar"][0])
    b = b.at[2, :o].set(params["b_omu"][0]).at[2, o:2 * o].set(params["b_ovar"][0])

    return dict(w1=w1, w2=w2, w3=w3, b=b)


def nn_actor_forward(x, packed, *, tile_b=256, compute_dtype=jnp.bfloat16):
    """x: [B, input_size] f32.  Returns (mu, var), each [B, output_size] f32."""
    B = x.shape[0]
    w1, w2, w3, b = packed["w1"], packed["w2"], packed["w3"], packed["b"]
    in_size = w1.shape[0]
    oc = w3.shape[1]
    o = oc // 2

    x = x.astype(compute_dtype)

    if B <= tile_b:
        tb = B                       # single tile == full batch (block == full dims is legal)
        b_pad = B
    else:
        tb = tile_b
        b_pad = pl.cdiv(B, tb) * tb
        if b_pad != B:
            x = jnp.pad(x, ((0, b_pad - B), (0, 0)))
    grid = (b_pad // tb,)

    out = pl.pallas_call(
        _nn_actor_kernel,
        out_shape=jax.ShapeDtypeStruct((b_pad, oc), jnp.float32),
        grid=grid,
        in_specs=[
            pl.BlockSpec((tb, in_size), lambda i: (i, 0)),   # x: streamed per batch tile
            pl.BlockSpec(w1.shape, lambda i: (0, 0)),        # weights/biases: VMEM-resident
            pl.BlockSpec(w2.shape, lambda i: (0, 0)),
            pl.BlockSpec(w3.shape, lambda i: (0, 0)),
            pl.BlockSpec(b.shape, lambda i: (0, 0)),
        ],
        out_specs=pl.BlockSpec((tb, oc), lambda i: (i, 0)),
        compiler_params=pltpu.CompilerParams(
            dimension_semantics=("parallel",),               # batch tiles across TCs on v7x
        ),
    )(x, w1, w2, w3, b)

    mu = out[:B, :o]
    var = out[:B, o:]
    return mu, var


def init_params(key, input_size, output_size=2, hidden_1=400, hidden_2=200):
    """Deterministic init mimicking PyTorch nn.Linear default (U[-1/sqrt(fan_in), +])."""
    def linear(k, fan_in, fan_out):
        kw, kb = jax.random.split(k)
        bound = 1.0 / jnp.sqrt(jnp.float32(fan_in))
        w = jax.random.uniform(kw, (fan_in, fan_out), jnp.float32, -bound, bound)
        bb = jax.random.uniform(kb, (1, fan_out), jnp.float32, -bound, bound)
        return w, bb

    k1, k2, k3, k4, k5 = jax.random.split(key, 5)
    w_in, b_in = linear(k1, input_size, hidden_1)
    w_hmu, b_hmu = linear(k2, hidden_1, hidden_2)
    w_hvar, b_hvar = linear(k3, hidden_1, hidden_2)
    w_omu, b_omu = linear(k4, hidden_2, output_size)
    w_ovar, b_ovar = linear(k5, hidden_2, output_size)
    return dict(
        w_in=w_in, b_in=b_in,
        w_hmu=w_hmu, b_hmu=b_hmu,
        w_hvar=w_hvar, b_hvar=b_hvar,
        w_omu=w_omu, b_omu=b_omu,
        w_ovar=w_ovar, b_ovar=b_ovar,
    )


def nn_actor_reference_f32(x, p):
    """Pure-f32 JAX reference matching the PyTorch forward exactly."""
    l1 = jnp.maximum(x @ p["w_in"] + p["b_in"], 0.0)
    l2 = jnp.maximum(l1 @ p["w_hmu"] + p["b_hmu"], 0.0)
    mu = jnp.tanh(l2 @ p["w_omu"] + p["b_omu"])
    l2_2 = jnp.maximum(l1 @ p["w_hvar"] + p["b_hvar"], 0.0)
    var = jax.nn.sigmoid(l2_2 @ p["w_ovar"] + p["b_ovar"])
    return mu, var


def nn_actor_reference_mixed(x, p, compute_dtype=jnp.bfloat16):
    """Reference with the same bf16-operand / f32-accumulate policy as the kernel."""
    def mm(a, w):
        return jnp.dot(a.astype(compute_dtype), w.astype(compute_dtype),
                       preferred_element_type=jnp.float32)
    l1 = jnp.maximum(mm(x, p["w_in"]) + p["b_in"], 0.0)
    l2 = jnp.maximum(mm(l1, p["w_hmu"]) + p["b_hmu"], 0.0)
    mu = jnp.tanh(mm(l2, p["w_omu"]) + p["b_omu"])
    l2_2 = jnp.maximum(mm(l1, p["w_hvar"]) + p["b_hvar"], 0.0)
    var = jax.nn.sigmoid(mm(l2_2, p["w_ovar"]) + p["b_ovar"])
    return mu, var


if __name__ == "__main__":
    key = jax.random.PRNGKey(0)
    kx, kp = jax.random.split(key)

    batch = 2
    input_size = 8          # e.g. LunarLanderContinuous-style state dim
    output_size = 2
    hidden_1, hidden_2 = 400, 200

    params = init_params(kp, input_size, output_size, hidden_1, hidden_2)
    x = jax.random.normal(kx, (batch, input_size), jnp.float32)

    packed = pack_actor_params(params)
    mu, var = nn_actor_forward(x, packed)
    jax.block_until_ready((mu, var))

    assert mu.shape == (batch, output_size) and var.shape == (batch, output_size)

    # Tight check against a reference using the same bf16-operand policy.
    mu_m, var_m = nn_actor_reference_mixed(x, params)
    assert jnp.allclose(mu, mu_m, atol=5e-3, rtol=5e-3)
    assert jnp.allclose(var, var_m, atol=5e-3, rtol=5e-3)

    # Loose sanity check against the pure-f32 PyTorch-equivalent reference
    # (tolerance reflects bf16 weight/activation quantization).
    mu_f, var_f = nn_actor_reference_f32(x, params)
    assert jnp.allclose(mu, mu_f, atol=5e-2, rtol=5e-2)
    assert jnp.allclose(var, var_f, atol=5e-2, rtol=5e-2)

    print("KERNEL_OK")
</pallas_src>

<mosaic_0001>
module attributes {stable_mosaic.version = 11 : i64} {
  func.func @_nn_actor_kernel(%arg0: i32, %arg1: memref<2x8xbf16, #tpu.memory_space<vmem>>, %arg2: memref<8x400xbf16, #tpu.memory_space<vmem>>, %arg3: memref<400x400xbf16, #tpu.memory_space<vmem>>, %arg4: memref<400x4xbf16, #tpu.memory_space<vmem>>, %arg5: memref<3x400xf32, #tpu.memory_space<vmem>>, %arg6: memref<2x4xf32, #tpu.memory_space<vmem>>) attributes {dimension_semantics = [#tpu.dimension_semantics<parallel>], iteration_bounds = array<i64: 1>, scalar_prefetch = 0 : i64, scratch_operands = 0 : i64, tpu.core_type = #tpu.core_type<tc>, window_params = [{transform_indices = @transform_0, window_bounds = array<i64: 2, 8>}, {pipeline_mode = #tpu.pipeline_mode<synchronous>, transform_indices = @transform_1, window_bounds = array<i64: 8, 400>}, {pipeline_mode = #tpu.pipeline_mode<synchronous>, transform_indices = @transform_2, window_bounds = array<i64: 400, 400>}, {pipeline_mode = #tpu.pipeline_mode<synchronous>, transform_indices = @transform_3, window_bounds = array<i64: 400, 4>}, {pipeline_mode = #tpu.pipeline_mode<synchronous>, transform_indices = @transform_4, window_bounds = array<i64: 3, 400>}, {transform_indices = @transform_5, window_bounds = array<i64: 2, 4>}]} {
    %c0 = arith.constant 0 : index
    %c0_0 = arith.constant 0 : index
    %0 = vector.load %arg1[%c0, %c0_0] : memref<2x8xbf16, #tpu.memory_space<vmem>>, vector<2x8xbf16>
    %c0_1 = arith.constant 0 : index
    %c0_2 = arith.constant 0 : index
    %1 = vector.load %arg2[%c0_1, %c0_2] : memref<8x400xbf16, #tpu.memory_space<vmem>>, vector<8x400xbf16>
    %cst = arith.constant dense<0.000000e+00> : vector<2x400xf32>
    %2 = tpu.matmul %0, %1, %cst {dimension_numbers = #tpu.dot_dimension_numbers<[1], [0], [0], [1], [0, 0, 1, 1], [], []>} : vector<2x8xbf16>, vector<8x400xbf16>, vector<2x400xf32> -> vector<2x400xf32>
    %c0_3 = arith.constant 0 : index
    %c0_4 = arith.constant 0 : index
    %3 = vector.load %arg5[%c0_3, %c0_4] : memref<3x400xf32, #tpu.memory_space<vmem>>, vector<1x400xf32>
    %4 = vector.broadcast %3 : vector<1x400xf32> to vector<2x400xf32>
    %5 = arith.addf %2, %4 : vector<2x400xf32>
    %cst_5 = arith.constant 0.000000e+00 : f32
    %6 = vector.broadcast %cst_5 : f32 to vector<2x400xf32>
    %7 = arith.maximumf %5, %6 : vector<2x400xf32>
    %8 = arith.truncf %7 : vector<2x400xf32> to vector<2x400xbf16>
    %c0_6 = arith.constant 0 : index
    %c0_7 = arith.constant 0 : index
    %9 = vector.load %arg3[%c0_6, %c0_7] : memref<400x400xbf16, #tpu.memory_space<vmem>>, vector<400x400xbf16>
    %cst_8 = arith.constant dense<0.000000e+00> : vector<2x400xf32>
    %10 = tpu.matmul %8, %9, %cst_8 {dimension_numbers = #tpu.dot_dimension_numbers<[1], [0], [0], [1], [0, 0, 1, 1], [], []>} : vector<2x400xbf16>, vector<400x400xbf16>, vector<2x400xf32> -> vector<2x400xf32>
    %c1 = arith.constant 1 : index
    %c0_9 = arith.constant 0 : index
    %11 = vector.load %arg5[%c1, %c0_9] : memref<3x400xf32, #tpu.memory_space<vmem>>, vector<1x400xf32>
    %12 = vector.broadcast %11 : vector<1x400xf32> to vector<2x400xf32>
    %13 = arith.addf %10, %12 : vector<2x400xf32>
    %cst_10 = arith.constant 0.000000e+00 : f32
    %14 = vector.broadcast %cst_10 : f32 to vector<2x400xf32>
    %15 = arith.maximumf %13, %14 : vector<2x400xf32>
    %16 = arith.truncf %15 : vector<2x400xf32> to vector<2x400xbf16>
    %c0_11 = arith.constant 0 : index
    %c0_12 = arith.constant 0 : index
    %17 = vector.load %arg4[%c0_11, %c0_12] : memref<400x4xbf16, #tpu.memory_space<vmem>>, vector<400x4xbf16>
    %cst_13 = arith.constant dense<0.000000e+00> : vector<2x4xf32>
    %18 = tpu.matmul %16, %17, %cst_13 {dimension_numbers = #tpu.dot_dimension_numbers<[1], [0], [0], [1], [0, 0, 1, 1], [], []>} : vector<2x400xbf16>, vector<400x4xbf16>, vector<2x4xf32> -> vector<2x4xf32>
    %c2 = arith.constant 2 : index
    %c0_14 = arith.constant 0 : index
    %19 = vector.load %arg5[%c2, %c0_14] : memref<3x400xf32, #tpu.memory_space<vmem>>, vector<1x4xf32>
    %20 = vector.broadcast %19 : vector<1x4xf32> to vector<2x4xf32>
    %21 = arith.addf %18, %20 : vector<2x4xf32>
    %22 = tpu.iota {dimensions = array<i32: 1>} : vector<2x4xi32>
    %c2_i32 = arith.constant 2 : i32
    %23 = vector.broadcast %c2_i32 : i32 to vector<2x4xi32>
    %24 = arith.cmpi slt, %22, %23 : vector<2x4xi32>
    %25 = math.tanh %21 : vector<2x4xf32>
    %26 = arith.negf %21 : vector<2x4xf32>
    %27 = math.exp %26 : vector<2x4xf32>
    %cst_15 = arith.constant 1.000000e+00 : f32
    %28 = vector.broadcast %cst_15 : f32 to vector<2x4xf32>
    %29 = arith.addf %28, %27 : vector<2x4xf32>
    %30 = arith.divf %28, %29 : vector<2x4xf32>
    %31 = arith.select %24, %25, %30 : vector<2x4xi1>, vector<2x4xf32>
    %c0_16 = arith.constant 0 : index
    %c0_17 = arith.constant 0 : index
    %32 = vector.load %arg6[%c0_16, %c0_17] : memref<2x4xf32, #tpu.memory_space<vmem>>, vector<2x4xf32>
    tpu.vector_store %arg6[%c0_16, %c0_17], %31 {strides = array<i32>} : memref<2x4xf32, #tpu.memory_space<vmem>>, vector<2x4xf32>,
    return
  }
  func.func @transform_0(%arg0: i32) -> (i32, i32) {
    %c0_i32 = arith.constant 0 : i32
    %c0_i32_0 = arith.constant 0 : i32
    return %arg0, %c0_i32 : i32, i32
  }
  func.func @transform_1(%arg0: i32) -> (i32, i32) {
    %c0_i32 = arith.constant 0 : i32
    %c0_i32_0 = arith.constant 0 : i32
    %c0_i32_1 = arith.constant 0 : i32
    return %c0_i32, %c0_i32_0 : i32, i32
  }
  func.func @transform_2(%arg0: i32) -> (i32, i32) {
    %c0_i32 = arith.constant 0 : i32
    %c0_i32_0 = arith.constant 0 : i32
    %c0_i32_1 = arith.constant 0 : i32
    return %c0_i32, %c0_i32_0 : i32, i32
  }
  func.func @transform_3(%arg0: i32) -> (i32, i32) {
    %c0_i32 = arith.constant 0 : i32
    %c0_i32_0 = arith.constant 0 : i32
    %c0_i32_1 = arith.constant 0 : i32
    return %c0_i32, %c0_i32_0 : i32, i32
  }
  func.func @transform_4(%arg0: i32) -> (i32, i32) {
    %c0_i32 = arith.constant 0 : i32
    %c0_i32_0 = arith.constant 0 : i32
    %c0_i32_1 = arith.constant 0 : i32
    return %c0_i32, %c0_i32_0 : i32, i32
  }
  func.func @transform_5(%arg0: i32) -> (i32, i32) {
    %c0_i32 = arith.constant 0 : i32
    %c0_i32_0 = arith.constant 0 : i32
    return %arg0, %c0_i32 : i32, i32
  }
}

</mosaic_0001>

<bundles_post_ra>
// kernel: tpu_custom_call.1
= control target key start
LH: loop header
LB: loop body
LE: loop exit
PB: predicated region body
PF: predicated region fallthrough
CT: control target
= control target key end

     0   :  { %10 = vsyncpa [#allocation3], 0  ;;  %s2140_s0 = inlined_call_operand.vmem [shape: bf16[2,8], index: 0, kind: input, shape index: {}]   ;;  %s2141_s1 = inlined_call_operand.vmem [shape: bf16[8,400], index: 1, kind: input, shape index: {}]   ;;  %s2142_s2 = inlined_call_operand.hbm [shape: bf16[400,400], index: 2, kind: input, shape index: {}]   ;;  %s2143_s3 = inlined_call_operand.vmem [shape: bf16[400,4], index: 3, kind: input, shape index: {}]   ;;  %s2144_s4 = inlined_call_operand.vmem [shape: f32[3,400], index: 4, kind: input, shape index: {}]   ;;  %s2145_s5 = inlined_call_operand.hbm [shape: f32[2,4], index: 5, kind: output, shape index: {}]  }
   0x1   :  { %11 = vsyncpa [#allocation4], 0  ;;  %s20_s20 = sshll.u32 %s2142_s2, 4  ;;  %s1968_s21 = smov [#allocation2]   ;;  %s21_s20 = int_to_ptr.hbm [resolvable:$true] %s20_s20 }
   0x2   :  { %s22_s22 = sshll.u32 %s1968_s21, 4  ;;  %s1969_s23 = smov 256   ;;  %s23_s22 = int_to_ptr.vmem [resolvable:$true] %s22_s22 }
   0x3   :  { %s1970_s24 = smov 16  }
   0x4   :  { %28 = dma.hbm_to_vmem [thread:$0]  %s21_s20, 12800, %s23_s22, [#allocation3], %s1969_s23, %s1969_s23, %s1970_s24  }
   0x5   :  { %1964 = dma.done.wait [#allocation3], 12800  }
   0x6   :  { %1965 = vsyncadd [#allocation3], 4294954496  ;;  %v39_v0 = vld [vmem:[%s2141_s1] sm:$0xff]  ;;  %v40_v1 = vld [vmem:[%s2141_s1 + $0x8] sm:$0xff]  ;;  %vm65_vm0 = vcmask 1043456   ;;  %vm61_vm1 = vcmask 64512  }
   0x7   :  { %v53_v2 = vunpack.c.l.b16 %v39_v0  ;;  %v54_v3 = vunpack.c.h.b16 %v39_v0  ;;  %v55_v4 = vunpack.c.l.b16 %v40_v1  ;;  %v56_v5 = vunpack.c.h.b16 %v40_v1  ;;  %v1388_v6 = vld [vmem:[#allocation2 + $0xe0] sm:$0xf]  ;;  %v1810_v7 = vld [vmem:[#allocation2 + $0xec] sm:$0xf0]  ;;  %v1808_v43 = vld [vmem:[#allocation2 + $0xe4] sm:$0xf] }
   0x8   :  { %v1516_v12 = vld [vmem:[#allocation2 + $0x1e0] sm:$0xf]  ;;  %v1389_v13 = vor.u32 %v1810_v7, %v1388_v6  ;;  %v1806_v15 = vld [vmem:[#allocation2 + $0xcc] sm:$0xf0]  ;;  %v1390_v44 = vld [vmem:[#allocation2 + $0xf0] sm:$0xf0] }
   0x9   :  { %v57_v8 = vpack.c.b16 %v53_v2, %v53_v2  ;;  %v58_v9 = vpack.c.b16 %v54_v3, %v54_v3  ;;  %v59_v10 = vpack.c.b16 %v55_v4, %v55_v4  ;;  %v60_v11 = vpack.c.b16 %v56_v5, %v56_v5  ;;  %v1372_v14 = vld [vmem:[#allocation2 + $0xc0] sm:$0xf]  ;;  %v1842_v16 = vld [vmem:[#allocation2 + $0x1ec] sm:$0xf0]  ;;  %v1804_v54 = vld [vmem:[#allocation2 + $0xc4] sm:$0xf] }
   0xa   :  { %v1500_v21 = vld [vmem:[#allocation2 + $0x1c0] sm:$0xf]  ;;  %v1517_v23 = vor.u32 %v1842_v16, %v1516_v12  ;;  %v1838_v24 = vld [vmem:[#allocation2 + $0x1cc] sm:$0xf0]  ;;  %v1373_v25 = vor.u32 %v1806_v15, %v1372_v14  ;;  %v1393_v49 = vor.u32 %v1808_v43, %v1390_v44  ;;  %v1374_v55 = vld [vmem:[#allocation2 + $0xd0] sm:$0xf0] }
   0xb   :  { %v67_v17 = vsel %vm65_vm0, %v57_v8, 0  ;;  %v70_v18 = vsel %vm65_vm0, %v58_v9, 0  ;;  %v73_v19 = vsel %vm65_vm0, %v59_v10, 0  ;;  %v76_v20 = vsel %vm65_vm0, %v60_v11, 0  ;;  %v38_v22 = vld [vmem:[%s2140_s0] sm:$0x1] }
   0xc   :  { %85 = vmatpush.bf16.msra.mxu0 %v67_v17  ;;  %98 = vmatpush.bf16.msra.mxu1 %v70_v18  ;;  %v1356_v26 = vld [vmem:[#allocation2 + $0xa0] sm:$0xf]  ;;  %v1501_v27 = vor.u32 %v1838_v24, %v1500_v21  ;;  %v1802_v28 = vld [vmem:[#allocation2 + $0xac] sm:$0xf0]  ;;  %v1377_v57 = vor.u32 %v1804_v54, %v1374_v55  ;;  %v1800_v61 = vld [vmem:[#allocation2 + $0xa4] sm:$0xf] }
   0xd   :  { %111 = vmatpush.bf16.msra.mxu2 %v73_v19  ;;  %124 = vmatpush.bf16.msra.mxu3 %v76_v20  ;;  %v1484_v29 = vld [vmem:[#allocation2 + $0x1a0] sm:$0xf]  ;;  %v1834_v30 = vld [vmem:[#allocation2 + $0x1ac] sm:$0xf0]  ;;  %v1357_v34 = vor.u32 %v1802_v28, %v1356_v26  ;;  %v1358_v62 = vld [vmem:[#allocation2 + $0xb0] sm:$0xf0] }
   0xe   :  { %v1340_v31 = vld [vmem:[#allocation2 + $0x80] sm:$0xf]  ;;  %v1874_v33 = vld [vmem:[#allocation2 + $0x2ec] sm:$0xf0]  ;;  %v1485_v36 = vor.u32 %v1834_v30, %v1484_v29  ;;  %v1361_v7 = vor.u32 %v1800_v61, %v1358_v62  ;;  %v1796_v9 = vld [vmem:[#allocation2 + $0x84] sm:$0xf] }
   0xf   :  { %1269 = vmatmul.msk.bf16.vlgmr.msra.gmra.mxu0 %vm61_vm1, %v38_v22  ;;  %1270 = vmatmul.msk.bf16.vlgmr.msra.gmra.mxu1 %vm61_vm1, %v38_v22  ;;  %v1644_v32 = vld [vmem:[#allocation2 + $0x2e0] sm:$0xf]  ;;  %v1798_v35 = vld [vmem:[#allocation2 + $0x8c] sm:$0xf0]  ;;  %v1342_v10 = vld [vmem:[#allocation2 + $0x90] sm:$0xf0] }
  0x10   :  { %753 = vmatpush.bf16.msrb.mxu0 %v1389_v13  ;;  %766 = vmatpush.bf16.msrb.mxu1 %v1517_v23  ;;  %v1645_v37 = vor.u32 %v1874_v33, %v1644_v32  ;;  %v1660_v38 = vld [vmem:[#allocation2 + $0x300] sm:$0xf]  ;;  %v1878_v39 = vld [vmem:[#allocation2 + $0x30c] sm:$0xf0]  ;;  %v1341_v51 = vor.u32 %v1798_v35, %v1340_v31  ;;  %v1345_v19 = vor.u32 %v1796_v9, %v1342_v10  ;;  %v1518_v28 = vld [vmem:[#allocation2 + $0x1f0] sm:$0xf0] }
  0x11   :  { %1271 = vmatmul.msk.bf16.vlgmr.msra.gmra.mxu2 %vm61_vm1, %v38_v22  ;;  %1272 = vmatmul.msk.bf16.vlgmr.msra.gmra.mxu3 %vm61_vm1, %v38_v22  ;;  %v1468_v40 = vld [vmem:[#allocation2 + $0x180] sm:$0xf]  ;;  %v1830_v41 = vld [vmem:[#allocation2 + $0x18c] sm:$0xf0]  ;;  %v1661_v42 = vor.u32 %v1878_v39, %v1660_v38  ;;  %v1872_v29 = vld [vmem:[#allocation2 + $0x2e4] sm:$0xf] }
  0x12   :  { %779 = vmatpush.bf16.msrb.mxu2 %v1645_v37  ;;  %v1628_v45 = vld [vmem:[#allocation2 + $0x2c0] sm:$0xf]  ;;  %v1870_v46 = vld [vmem:[#allocation2 + $0x2cc] sm:$0xf0]  ;;  %v1469_v52 = vor.u32 %v1830_v41, %v1468_v40  ;;  %v1646_v30 = vld [vmem:[#allocation2 + $0x2f0] sm:$0xf0] }
  0x13   :  { %v1324_v47 = vld [vmem:[#allocation2 + $0x60] sm:$0xf]  ;;  %v1794_v48 = vld [vmem:[#allocation2 + $0x6c] sm:$0xf0]  ;;  %799 = vmatpush.bf16.msrb.mxu3 %v1661_v42  ;;  %v1629_v50 = vor.u32 %v1870_v46, %v1628_v45  ;;  %v1649_v35 = vor.u32 %v1872_v29, %v1646_v30  ;;  %v1868_v37 = vld [vmem:[#allocation2 + $0x2c4] sm:$0xf] }
  0x14   :  { %754 = vmatpush.bf16.msrb.mxu0 %v1373_v25  ;;  %767 = vmatpush.bf16.msrb.mxu1 %v1501_v27  ;;  %v1452_v53 = vld [vmem:[#allocation2 + $0x160] sm:$0xf]  ;;  %v1826_v56 = vld [vmem:[#allocation2 + $0x16c] sm:$0xf0]  ;;  %v1325_v63 = vor.u32 %v1794_v48, %v1324_v47  ;;  %v1840_v25 = vld [vmem:[#allocation2 + $0x1e4] sm:$0xf] }
  0x15   :  { %v1612_v58 = vld [vmem:[#allocation2 + $0x2a0] sm:$0xf]  ;;  %v1866_v59 = vld [vmem:[#allocation2 + $0x2ac] sm:$0xf0]  ;;  %v1453_v1 = vor.u32 %v1826_v56, %v1452_v53  ;;  %v1521_v33 = vor.u32 %v1840_v25, %v1518_v28  ;;  %v1630_v38 = vld [vmem:[#allocation2 + $0x2d0] sm:$0xf0] }
  0x16   :  { %780 = vmatpush.bf16.msrb.mxu2 %v1629_v50  ;;  %v1613_v60 = vor.u32 %v1866_v59, %v1612_v58  ;;  %v1308_v0 = vld [vmem:[#allocation2 + $0x40] sm:$0xf]  ;;  %v1862_v3 = vld [vmem:[#allocation2 + $0x28c] sm:$0xf0]  ;;  %v1633_v40 = vor.u32 %v1868_v37, %v1630_v38  ;;  %v1832_v41 = vld [vmem:[#allocation2 + $0x1a4] sm:$0xf] }
  0x17   :  { %805 = vmatpush.bf16.msra.mxu3 %v1393_v49  ;;  %v1596_v2 = vld [vmem:[#allocation2 + $0x280] sm:$0xf]  ;;  %v1790_v4 = vld [vmem:[#allocation2 + $0x4c] sm:$0xf0]  ;;  %v1486_v42 = vld [vmem:[#allocation2 + $0x1b0] sm:$0xf0] }
  0x18   :  { %755 = vmatpush.bf16.msrb.mxu0 %v1357_v34  ;;  %768 = vmatpush.bf16.msrb.mxu1 %v1485_v36  ;;  %v1436_v5 = vld [vmem:[#allocation2 + $0x140] sm:$0xf]  ;;  %v1822_v6 = vld [vmem:[#allocation2 + $0x14c] sm:$0xf0]  ;;  %v1597_v8 = vor.u32 %v1862_v3, %v1596_v2  ;;  %v1309_v13 = vor.u32 %v1790_v4, %v1308_v0  ;;  %v1836_v34 = vld [vmem:[#allocation2 + $0x1c4] sm:$0xf]  ;;  %v1489_v43 = vor.u32 %v1832_v41, %v1486_v42 }
  0x19   :  { %v1580_v11 = vld [vmem:[#allocation2 + $0x260] sm:$0xf]  ;;  %v1858_v12 = vld [vmem:[#allocation2 + $0x26c] sm:$0xf0]  ;;  %v1437_v15 = vor.u32 %v1822_v6, %v1436_v5  ;;  %v1502_v36 = vld [vmem:[#allocation2 + $0x1d0] sm:$0xf0] }
  0x1a   :  { %781 = vmatpush.bf16.msrb.mxu2 %v1613_v60  ;;  %v1292_v14 = vld [vmem:[#allocation2 + $0x20] sm:$0xf]  ;;  %v1786_v16 = vld [vmem:[#allocation2 + $0x2c] sm:$0xf0]  ;;  %v1581_v20 = vor.u32 %v1858_v12, %v1580_v11  ;;  %v1505_v39 = vor.u32 %v1836_v34, %v1502_v36  ;;  %v1828_v44 = vld [vmem:[#allocation2 + $0x184] sm:$0xf] }
  0x1b   :  { %806 = vmatpush.bf16.msra.mxu3 %v1377_v57  ;;  %v1420_v17 = vld [vmem:[#allocation2 + $0x120] sm:$0xf]  ;;  %v1818_v18 = vld [vmem:[#allocation2 + $0x12c] sm:$0xf0]  ;;  %v1293_v21 = vor.u32 %v1786_v16, %v1292_v14  ;;  %v1470_v45 = vld [vmem:[#allocation2 + $0x190] sm:$0xf0] }
  0x1c   :  { %756 = vmatpush.bf16.msrb.mxu0 %v1341_v51  ;;  %769 = vmatpush.bf16.msrb.mxu1 %v1469_v52  ;;  %v1276_v22 = vld [vmem:[#allocation2] sm:$0xf]  ;;  %v1782_v23 = vld [vmem:[#allocation2 + $0xc] sm:$0xf0]  ;;  %v1421_v24 = vor.u32 %v1818_v18, %v1420_v17  ;;  %v1473_v46 = vor.u32 %v1828_v44, %v1470_v45  ;;  %v1824_v47 = vld [vmem:[#allocation2 + $0x164] sm:$0xf] }
  0x1d   :  { %v1404_v26 = vld [vmem:[#allocation2 + $0x100] sm:$0xf]  ;;  %v1814_v27 = vld [vmem:[#allocation2 + $0x10c] sm:$0xf0]  ;;  %v1277_v31 = vor.u32 %v1782_v23, %v1276_v22  ;;  %v1454_v48 = vld [vmem:[#allocation2 + $0x170] sm:$0xf0] }
  0x1e   :  { %782 = vmatpush.bf16.msrb.mxu2 %v1597_v8  ;;  %v1405_v32 = vor.u32 %v1814_v27, %v1404_v26  ;;  %v1457_v49 = vor.u32 %v1824_v47, %v1454_v48  ;;  %v1820_v50 = vld [vmem:[#allocation2 + $0x144] sm:$0xf]  ;;  %v1438_v51 = vld [vmem:[#allocation2 + $0x150] sm:$0xf0]  ;;  %v1564_v58 = vld [vmem:[#allocation2 + $0x240] sm:$0xf] }
  0x1f   :  { %807 = vmatpush.bf16.msra.mxu3 %v1361_v7  ;;  %v1441_v52 = vor.u32 %v1820_v50, %v1438_v51  ;;  %v1792_v53 = vld [vmem:[#allocation2 + $0x64] sm:$0xf]  ;;  %v1326_v54 = vld [vmem:[#allocation2 + $0x70] sm:$0xf0]  ;;  %v1854_v59 = vld [vmem:[#allocation2 + $0x24c] sm:$0xf0] }
  0x20   :  { %757 = vmatpush.bf16.msrb.mxu0 %v1325_v63  ;;  %770 = vmatpush.bf16.msrb.mxu1 %v1453_v1  ;;  %v1864_v55 = vld [vmem:[#allocation2 + $0x2a4] sm:$0xf]  ;;  %v1329_v56 = vor.u32 %v1792_v53, %v1326_v54  ;;  %v1614_v57 = vld [vmem:[#allocation2 + $0x2b0] sm:$0xf0]  ;;  %v1565_v61 = vor.u32 %v1854_v59, %v1564_v58  ;;  %v1548_v6 = vld [vmem:[#allocation2 + $0x220] sm:$0xf] }
  0x21   :  { %v1617_v60 = vor.u32 %v1864_v55, %v1614_v57  ;;  %v1816_v62 = vld [vmem:[#allocation2 + $0x124] sm:$0xf]  ;;  %v1422_v63 = vld [vmem:[#allocation2 + $0x130] sm:$0xf0]  ;;  %v1850_v7 = vld [vmem:[#allocation2 + $0x22c] sm:$0xf0] }
  0x22   :  { %783 = vmatpush.bf16.msrb.mxu2 %v1581_v20  ;;  %v1425_v0 = vor.u32 %v1816_v62, %v1422_v63  ;;  %v1788_v1 = vld [vmem:[#allocation2 + $0x44] sm:$0xf]  ;;  %v1310_v2 = vld [vmem:[#allocation2 + $0x50] sm:$0xf0]  ;;  %v1549_v9 = vor.u32 %v1850_v7, %v1548_v6  ;;  %v1846_v20 = vld [vmem:[#allocation2 + $0x20c] sm:$0xf0] }
  0x23   :  { %808 = vmatpush.bf16.msra.mxu3 %v1345_v19  ;;  %v1860_v3 = vld [vmem:[#allocation2 + $0x284] sm:$0xf]  ;;  %v1313_v4 = vor.u32 %v1788_v1, %v1310_v2  ;;  %v1598_v5 = vld [vmem:[#allocation2 + $0x290] sm:$0xf0]  ;;  %v1532_v19 = vld [vmem:[#allocation2 + $0x200] sm:$0xf] }
  0x24   :  { %758 = vmatpush.bf16.msrb.mxu0 %v1309_v13  ;;  %771 = vmatpush.bf16.msrb.mxu1 %v1437_v15  ;;  %v1601_v8 = vor.u32 %v1860_v3, %v1598_v5  ;;  %v1812_v10 = vld [vmem:[#allocation2 + $0x104] sm:$0xf]  ;;  %v1406_v11 = vld [vmem:[#allocation2 + $0x110] sm:$0xf0]  ;;  %v1652_v42 = vld [vmem:[#allocation2 + $0x2e8] sm:$0xf] }
  0x25   :  { %v1409_v12 = vor.u32 %v1812_v10, %v1406_v11  ;;  %v1784_v13 = vld [vmem:[#allocation2 + $0x24] sm:$0xf]  ;;  %v1294_v14 = vld [vmem:[#allocation2 + $0x30] sm:$0xf0]  ;;  %v1875_v45 = vld [vmem:[#allocation2 + $0x2f4] sm:$0xf0] }
  0x26   :  { %784 = vmatpush.bf16.msrb.mxu2 %v1565_v61  ;;  %v1297_v15 = vor.u32 %v1784_v13, %v1294_v14  ;;  %v1856_v16 = vld [vmem:[#allocation2 + $0x264] sm:$0xf]  ;;  %v1582_v17 = vld [vmem:[#allocation2 + $0x270] sm:$0xf0]  ;;  %v1879_v47 = vld [vmem:[#allocation2 + $0x314] sm:$0xf0] }
  0x27   :  { %809 = vmatpush.bf16.msra.mxu3 %v1329_v56  ;;  %v1585_v18 = vor.u32 %v1856_v16, %v1582_v17  ;;  %v1780_v22 = vld [vmem:[#allocation2 + $0x4] sm:$0xf]  ;;  %v1278_v23 = vld [vmem:[#allocation2 + $0x10] sm:$0xf0]  ;;  %v1636_v56 = vld [vmem:[#allocation2 + $0x2c8] sm:$0xf] }
  0x28   :  { %759 = vmatpush.bf16.msrb.mxu0 %v1293_v21  ;;  %772 = vmatpush.bf16.msrb.mxu1 %v1421_v24  ;;  %v1533_v21 = vor.u32 %v1846_v20, %v1532_v19  ;;  %v1852_v24 = vld [vmem:[#allocation2 + $0x244] sm:$0xf]  ;;  %v1281_v25 = vor.u32 %v1780_v22, %v1278_v23  ;;  %v1566_v26 = vld [vmem:[#allocation2 + $0x250] sm:$0xf0]  ;;  %v1871_v57 = vld [vmem:[#allocation2 + $0x2d4] sm:$0xf0] }
  0x29   :  { %v1876_v27 = vld [vmem:[#allocation2 + $0x304] sm:$0xf]  ;;  %v1662_v28 = vld [vmem:[#allocation2 + $0x310] sm:$0xf0]  ;;  %v1569_v29 = vor.u32 %v1852_v24, %v1566_v26  ;;  %v1637_v63 = vor.u32 %v1871_v57, %v1636_v56  ;;  %v1524_v1 = vld [vmem:[#allocation2 + $0x1e8] sm:$0xf] }
  0x2a   :  { %785 = vmatpush.bf16.msrb.mxu2 %v1549_v9  ;;  %v1665_v30 = vor.u32 %v1876_v27, %v1662_v28  ;;  %v1844_v34 = vld [vmem:[#allocation2 + $0x204] sm:$0xf]  ;;  %v1843_v2 = vld [vmem:[#allocation2 + $0x1f4] sm:$0xf0]  ;;  %v1620_v5 = vld [vmem:[#allocation2 + $0x2a8] sm:$0xf] }
  0x2b   :  { %810 = vmatpush.bf16.msra.mxu3 %v1313_v4  ;;  %v41_v37 = vld [vmem:[%s2144_s4] ss:$4 sm:$0xf]  ;;  %v1867_v6 = vld [vmem:[#allocation2 + $0x2b4] sm:$0xf0]  ;;  %vm749_vm2 = vcmask 130048   ;;  %v1525_v10 = vor.u32 %v1843_v2, %v1524_v1 }
  0x2c   :  { %760 = vmatpush.bf16.msrb.mxu0 %v1277_v31  ;;  %773 = vmatpush.bf16.msrb.mxu1 %v1405_v32  ;;  %v1848_v31 = vld [vmem:[#allocation2 + $0x224] sm:$0xf]  ;;  %v1550_v32 = vld [vmem:[#allocation2 + $0x230] sm:$0xf0]  ;;  %v43_v38 = vperm.slane %v41_v37, 0  ;;  %v45_v50 = vperm.slane %v41_v37, 2  ;;  %v1621_v14 = vor.u32 %v1867_v6, %v1620_v5 }
  0x2d   :  { %v46_v51 = vperm.slane %v41_v37, 3  ;;  %v1380_v11 = vld [vmem:[#allocation2 + $0xc8] sm:$0xf]  ;;  %v1839_v17 = vld [vmem:[#allocation2 + $0x1d4] sm:$0xf0]  ;;  %s1259_s30 = sshll.u32 %s2145_s5, 4  ;;  %s1260_s30 = int_to_ptr.hbm [resolvable:$true] %s1259_s30 }
  0x2e   :  { %786 = vmatpush.bf16.msrb.mxu2 %v1533_v21  ;;  %v1508_v16 = vld [vmem:[#allocation2 + $0x1c8] sm:$0xf]  ;;  %v1863_v19 = vld [vmem:[#allocation2 + $0x294] sm:$0xf0]  ;;  %v1801_v57 = vld [vmem:[#allocation2 + $0xac] sm:$0xf] }
  0x2f   :  { %811 = vmatpush.bf16.msra.mxu3 %v1297_v15  ;;  %v1807_v15 = vld [vmem:[#allocation2 + $0xd4] sm:$0xf0]  ;;  %v1509_v23 = vor.u32 %v1839_v17, %v1508_v16  ;;  %v1364_v24 = vld [vmem:[#allocation2 + $0xa8] sm:$0xf]  ;;  %v1797_v5 = vld [vmem:[#allocation2 + $0x8c] sm:$0xf] }
  0x30   :  { %818 = vmatpush.bf16.msra.mxu0 %v1521_v33  ;;  %831 = vmatpush.bf16.msra.mxu1 %v1649_v35  ;;  %v1553_v33 = vor.u32 %v1848_v31, %v1550_v32  ;;  %v1534_v35 = vld [vmem:[#allocation2 + $0x210] sm:$0xf0]  ;;  %v1381_v22 = vor.u32 %v1807_v15, %v1380_v11  ;;  %v1803_v26 = vld [vmem:[#allocation2 + $0xb4] sm:$0xf0]  ;;  %v1492_v27 = vld [vmem:[#allocation2 + $0x1a8] sm:$0xf] }
  0x31   :  { %v1537_v36 = vor.u32 %v1844_v34, %v1534_v35  ;;  %v1835_v28 = vld [vmem:[#allocation2 + $0x1b4] sm:$0xf0]  ;;  %v1809_v31 = vld [vmem:[#allocation2 + $0xec] sm:$0xf]  ;;  %v1398_v32 = vld [vmem:[#allocation2 + $0xf8] sm:$0xf0] }
  0x32   :  { %851 = vmatpush.bf16.msra.mxu2 %v1665_v30  ;;  %v1859_v30 = vld [vmem:[#allocation2 + $0x274] sm:$0xf0]  ;;  %v1493_v34 = vor.u32 %v1835_v28, %v1492_v27  ;;  %v1348_v35 = vld [vmem:[#allocation2 + $0x88] sm:$0xf]  ;;  %v1350_v6 = vld [vmem:[#allocation2 + $0x98] sm:$0xf0] }
  0x33   :  { %812 = vmatpush.bf16.msra.mxu3 %v1281_v25  ;;  %v1851_v56 = vld [vmem:[#allocation2 + $0x234] sm:$0xf0]  ;;  %v1670_v11 = vld [vmem:[#allocation2 + $0x318] sm:$0xf0]  ;;  %v1428_v15 = vld [vmem:[#allocation2 + $0x128] sm:$0xf] }
  0x34   :  { %819 = vmatpush.bf16.msra.mxu0 %v1505_v39  ;;  %832 = vmatpush.bf16.msra.mxu1 %v1633_v40  ;;  %v44_v39 = vperm.slane %v41_v37, 1  ;;  %v1476_v37 = vld [vmem:[#allocation2 + $0x188] sm:$0xf]  ;;  %v1819_v16 = vld [vmem:[#allocation2 + $0x134] sm:$0xf0]  ;;  %vm1250_vm8 = vcmask 25600  }
  0x35   :  { %v1815_v27 = vld [vmem:[#allocation2 + $0x114] sm:$0xf0]  ;;  %v1841_v28 = vld [vmem:[#allocation2 + $0x1ec] sm:$0xf] }
  0x38   :  { %820 = vmatpush.bf16.msra.mxu0 %v1489_v43  ;;  %833 = vmatpush.bf16.msra.mxu1 %v1617_v60  ;;  %v1396_v60 = vld [vmem:[#allocation2 + $0xe8] sm:$0xf] }
  0x3c   :  { %821 = vmatpush.bf16.msra.mxu0 %v1473_v46  ;;  %834 = vmatpush.bf16.msra.mxu1 %v1601_v8  ;;  %v1668_v46 = vld [vmem:[#allocation2 + $0x308] sm:$0xf] }
  0x3d   :  { %v1669_v53 = vor.u32 %v1879_v47, %v1668_v46  ;;  %v1332_v47 = vld [vmem:[#allocation2 + $0x68] sm:$0xf] }
  0x40   :  { %822 = vmatpush.bf16.msra.mxu0 %v1457_v49  ;;  %835 = vmatpush.bf16.msra.mxu1 %v1585_v18  ;;  %v1604_v18 = vld [vmem:[#allocation2 + $0x288] sm:$0xf] }
  0x41   :  { %v1605_v25 = vor.u32 %v1863_v19, %v1604_v18  ;;  %v1353_v18 = vor.u32 %v1797_v5, %v1350_v6  ;;  %v1793_v19 = vld [vmem:[#allocation2 + $0x6c] sm:$0xf]  ;;  %v1462_v6 = vld [vmem:[#allocation2 + $0x178] sm:$0xf0] }
  0x42   :  { %v1825_v5 = vld [vmem:[#allocation2 + $0x16c] sm:$0xf] }
  0x44   :  { %823 = vmatpush.bf16.msra.mxu0 %v1441_v52  ;;  %836 = vmatpush.bf16.msra.mxu1 %v1569_v29  ;;  %v1653_v52 = vor.u32 %v1875_v45, %v1652_v42  ;;  %v1588_v29 = vld [vmem:[#allocation2 + $0x268] sm:$0xf]  ;;  %v1855_v42 = vld [vmem:[#allocation2 + $0x254] sm:$0xf0] }
  0x48   :  { %824 = vmatpush.bf16.msra.mxu0 %v1425_v0  ;;  %837 = vmatpush.bf16.msra.mxu1 %v1553_v33  ;;  %v1811_v0 = vld [vmem:[#allocation2 + $0xf4] sm:$0xf0]  ;;  %v1365_v33 = vor.u32 %v1803_v26, %v1364_v24  ;;  %v1284_v24 = vld [vmem:[#allocation2 + $0x8] sm:$0xf] }
  0x49   :  { %v1397_v9 = vor.u32 %v1811_v0, %v1396_v60  ;;  %v1823_v0 = vld [vmem:[#allocation2 + $0x154] sm:$0xf0]  ;;  %v1412_v26 = vld [vmem:[#allocation2 + $0x108] sm:$0xf] }
  0x4c   :  { %825 = vmatpush.bf16.msra.mxu0 %v1409_v12  ;;  %838 = vmatpush.bf16.msra.mxu1 %v1537_v36  ;;  %v1799_v36 = vld [vmem:[#allocation2 + $0x94] sm:$0xf0] }
  0x4d   :  { %v1349_v45 = vor.u32 %v1799_v36, %v1348_v35  ;;  %v1413_v36 = vor.u32 %v1815_v27, %v1412_v26  ;;  %v1845_v26 = vld [vmem:[#allocation2 + $0x20c] sm:$0xf]  ;;  %v1542_v27 = vld [vmem:[#allocation2 + $0x218] sm:$0xf0] }
  0x8c   :  { %v87_v40 = vpop.f32.mrf.mxu0  ;;  %v100_v41 = vpop.f32.mrf.mxu1 }
  0x8d   :  { %v88_v43 = vadd.f32 %v87_v40, %v43_v38  ;;  %v101_v44 = vadd.f32 %v100_v41, %v44_v39  ;;  %v1831_v38 = vld [vmem:[#allocation2 + $0x194] sm:$0xf0]  ;;  %v1589_v39 = vor.u32 %v1859_v30, %v1588_v29  ;;  %v1401_v40 = vor.u32 %v1809_v31, %v1398_v32  ;;  %v1572_v41 = vld [vmem:[#allocation2 + $0x248] sm:$0xf]  ;;  %v1526_v30 = vld [vmem:[#allocation2 + $0x1f8] sm:$0xf0] }
  0x8e   :  { %v1477_v46 = vor.u32 %v1831_v38, %v1476_v37  ;;  %v1873_v31 = vld [vmem:[#allocation2 + $0x2ec] sm:$0xf]  ;;  %v1654_v32 = vld [vmem:[#allocation2 + $0x2f8] sm:$0xf0]  ;;  %v1529_v37 = vor.u32 %v1841_v28, %v1526_v30  ;;  %v1545_v28 = vor.u32 %v1845_v26, %v1542_v27 }
  0x8f   :  { %v130_v48 = vmax.f32 %v88_v43, 0.0  ;;  %v131_v49 = vmax.f32 %v101_v44, 0.0  ;;  %v1805_v43 = vld [vmem:[#allocation2 + $0xcc] sm:$0xf]  ;;  %v1382_v44 = vld [vmem:[#allocation2 + $0xd8] sm:$0xf0]  ;;  %v1657_v38 = vor.u32 %v1873_v31, %v1654_v32 }
  0x90   :  { %v1883_v30 = vld [vmem:[%s2143_s3 + $0x18] sm:$0xff]  ;;  %v1882_v31 = vld [vmem:[%s2143_s3 + $0x10] sm:$0xff] }
  0x91   :  { %v2021_v54 = vpack.c.bf16 %v130_v48, %v130_v48  ;;  %v2023_v55 = vpack.c.bf16 %v131_v49, %v131_v49  ;;  %v1795_v48 = vld [vmem:[#allocation2 + $0x74] sm:$0xf0]  ;;  %v1460_v49 = vld [vmem:[#allocation2 + $0x168] sm:$0xf]  ;;  %v1894_v32 = vld [vmem:[%s2143_s3 + $0x70] sm:$0xff] }
  0x93   :  { %761 = vmatmul.bf16.vlgmr.msrb.gmra.mxu0 %v2021_v54  ;;  %774 = vmatmul.bf16.vlgmr.msrb.gmra.mxu1 %v2023_v55 }
  0x94   :  { %v113_v58 = vpop.f32.mrf.mxu2  ;;  %v126_v59 = vpop.f32.mrf.mxu3  ;;  %883 = vmatpush.bf16.msrb.mxu0 %v1653_v52  ;;  %903 = vmatpush.bf16.msrb.mxu1 %v1669_v53  ;;  %v1385_v52 = vor.u32 %v1805_v43, %v1382_v44  ;;  %v1556_v53 = vld [vmem:[#allocation2 + $0x228] sm:$0xf]  ;;  %v1638_v43 = vld [vmem:[#allocation2 + $0x2d8] sm:$0xf0]  ;;  %v1785_v44 = vld [vmem:[#allocation2 + $0x2c] sm:$0xf] }
  0x95   :  { %v114_v61 = vadd.f32 %v113_v58, %v45_v50  ;;  %v127_v62 = vadd.f32 %v126_v59, %v46_v51  ;;  %v102_v3 = vpop.f32.mrf.mxu1  ;;  %v89_v4 = vpop.f32.mrf.mxu0  ;;  %v1827_v50 = vld [vmem:[#allocation2 + $0x174] sm:$0xf0]  ;;  %v1573_v51 = vor.u32 %v1855_v42, %v1572_v41  ;;  %v1366_v58 = vld [vmem:[#allocation2 + $0xb8] sm:$0xf0]  ;;  %v1333_v59 = vor.u32 %v1795_v48, %v1332_v47  ;;  %v1869_v42 = vld [vmem:[#allocation2 + $0x2cc] sm:$0xf] }
  0x96   :  { %v1461_v60 = vor.u32 %v1827_v50, %v1460_v49  ;;  %v1557_v1 = vor.u32 %v1851_v56, %v1556_v53  ;;  %v1369_v2 = vor.u32 %v1801_v57, %v1366_v58  ;;  %v1540_v3 = vld [vmem:[#allocation2 + $0x208] sm:$0xf]  ;;  %v1847_v4 = vld [vmem:[#allocation2 + $0x214] sm:$0xf0]  ;;  %v1510_v41 = vld [vmem:[#allocation2 + $0x1d8] sm:$0xf0]  ;;  %v1641_v48 = vor.u32 %v1869_v42, %v1638_v43 }
  0x97   :  { %v132_v7 = vmax.f32 %v114_v61, 0.0  ;;  %v133_v8 = vmax.f32 %v127_v62, 0.0  ;;  %v1316_v61 = vld [vmem:[#allocation2 + $0x48] sm:$0xf]  ;;  %v1791_v62 = vld [vmem:[#allocation2 + $0x54] sm:$0xf0]  ;;  %v1541_v17 = vor.u32 %v1847_v4, %v1540_v3 }
  0x98   :  { %884 = vmatpush.bf16.msrb.mxu0 %v1637_v63  ;;  %v1444_v63 = vld [vmem:[#allocation2 + $0x148] sm:$0xf]  ;;  %v1833_v49 = vld [vmem:[#allocation2 + $0x1ac] sm:$0xf]  ;;  %v1494_v50 = vld [vmem:[#allocation2 + $0x1b8] sm:$0xf0] }
  0x99   :  { %v2027_v12 = vpack.c.bf16 %v132_v7, %v132_v7  ;;  %v2029_v13 = vpack.c.bf16 %v133_v8, %v133_v8  ;;  %v1317_v7 = vor.u32 %v1791_v62, %v1316_v61  ;;  %v1445_v8 = vor.u32 %v1823_v0, %v1444_v63  ;;  %v1622_v53 = vld [vmem:[#allocation2 + $0x2b8] sm:$0xf0]  ;;  %v1886_v56 = vld [vmem:[%s2143_s3 + $0x30] sm:$0xff]  ;;  %v1781_v57 = vld [vmem:[#allocation2 + $0xc] sm:$0xf] }
  0x9a   :  { %v1286_v58 = vld [vmem:[#allocation2 + $0x18] sm:$0xf0]  ;;  %v1829_v61 = vld [vmem:[#allocation2 + $0x18c] sm:$0xf] }
  0x9b   :  { %787 = vmatmul.bf16.vlgmr.msrb.gmra.mxu2 %v2027_v12  ;;  %1674 = vmatmul.msk.bf16.vlgmr.msrb.gmra.mxu3 %vm749_vm2, %v2029_v13  ;;  %v1478_v62 = vld [vmem:[#allocation2 + $0x198] sm:$0xf0]  ;;  %v1289_v63 = vor.u32 %v1781_v57, %v1286_v58  ;;  %v1861_v0 = vld [vmem:[#allocation2 + $0x28c] sm:$0xf]  ;;  %v1898_v58 = vld [vmem:[%s2143_s3 + $0x90] sm:$0xff] }
  0x9c   :  { %857 = vmatpush.bf16.msrb.mxu2 %v1397_v9  ;;  %870 = vmatpush.bf16.msrb.mxu3 %v1525_v10  ;;  %v115_v20 = vpop.f32.mrf.mxu2  ;;  %v128_v21 = vpop.f32.mrf.mxu3  ;;  %v1300_v9 = vld [vmem:[#allocation2 + $0x28] sm:$0xf]  ;;  %v1877_v10 = vld [vmem:[#allocation2 + $0x30c] sm:$0xf]  ;;  %v1481_v3 = vor.u32 %v1829_v61, %v1478_v62 }
  0x9d   :  { %885 = vmatpush.bf16.msrb.mxu0 %v1621_v14  ;;  %v1787_v14 = vld [vmem:[#allocation2 + $0x34] sm:$0xf0]  ;;  %v1334_v20 = vld [vmem:[#allocation2 + $0x78] sm:$0xf0]  ;;  %v1673_v21 = vor.u32 %v1877_v10, %v1670_v11  ;;  %v1821_v11 = vld [vmem:[#allocation2 + $0x14c] sm:$0xf] }
  0x9e   :  { %v1337_v29 = vor.u32 %v1793_v19, %v1334_v20  ;;  %v1817_v19 = vld [vmem:[#allocation2 + $0x12c] sm:$0xf]  ;;  %v1430_v20 = vld [vmem:[#allocation2 + $0x138] sm:$0xf0] }
  0xa0   :  { %858 = vmatpush.bf16.msrb.mxu2 %v1381_v22  ;;  %871 = vmatpush.bf16.msrb.mxu3 %v1509_v23  ;;  %v1301_v22 = vor.u32 %v1787_v14, %v1300_v9  ;;  %v1429_v23 = vor.u32 %v1819_v16, %v1428_v15  ;;  %v1465_v9 = vor.u32 %v1825_v5, %v1462_v6  ;;  %v1446_v14 = vld [vmem:[#allocation2 + $0x158] sm:$0xf0]  ;;  %v1853_v15 = vld [vmem:[#allocation2 + $0x24c] sm:$0xf] }
  0xa1   :  { %886 = vmatpush.bf16.msrb.mxu0 %v1605_v25  ;;  %v1783_v25 = vld [vmem:[#allocation2 + $0x14] sm:$0xf0]  ;;  %v1574_v16 = vld [vmem:[#allocation2 + $0x258] sm:$0xf0] }
  0xa2   :  { %v1285_v35 = vor.u32 %v1783_v25, %v1284_v24  ;;  %v1813_v25 = vld [vmem:[#allocation2 + $0x10c] sm:$0xf] }
  0xa3   :  { %826 = vmatmul.bf16.vlgmr.msra.gmra.mxu0 %v2023_v55  ;;  %839 = vmatmul.bf16.vlgmr.msra.gmra.mxu1 %v2027_v12 }
  0xa4   :  { %859 = vmatpush.bf16.msrb.mxu2 %v1365_v33  ;;  %872 = vmatpush.bf16.msrb.mxu3 %v1493_v34  ;;  %v1789_v33 = vld [vmem:[#allocation2 + $0x4c] sm:$0xf]  ;;  %v1318_v34 = vld [vmem:[#allocation2 + $0x58] sm:$0xf0] }
  0xa5   :  { %887 = vmatpush.bf16.msrb.mxu0 %v1589_v39  ;;  %909 = vmatpush.bf16.msra.mxu1 %v1401_v40  ;;  %v1837_v39 = vld [vmem:[#allocation2 + $0x1cc] sm:$0xf]  ;;  %v1321_v40 = vor.u32 %v1789_v33, %v1318_v34  ;;  %v1880_v33 = vld [vmem:[%s2143_s3] sm:$0xff] }
  0xa6   :  { %v1513_v47 = vor.u32 %v1837_v39, %v1510_v41  ;;  %v1893_v34 = vld [vmem:[%s2143_s3 + $0x68] sm:$0xff]  ;;  %v1902_v39 = vld [vmem:[%s2143_s3 + $0xb0] sm:$0xff] }
  0xa8   :  { %860 = vmatpush.bf16.msrb.mxu2 %v1349_v45  ;;  %873 = vmatpush.bf16.msrb.mxu3 %v1477_v46  ;;  %v1302_v45 = vld [vmem:[#allocation2 + $0x38] sm:$0xf0] }
  0xa9   :  { %888 = vmatpush.bf16.msrb.mxu0 %v1573_v51  ;;  %910 = vmatpush.bf16.msra.mxu1 %v1385_v52  ;;  %v1887_v46 = vld [vmem:[%s2143_s3 + $0x38] sm:$0xff]  ;;  %v1305_v51 = vor.u32 %v1785_v44, %v1302_v45  ;;  %v1865_v52 = vld [vmem:[#allocation2 + $0x2ac] sm:$0xf] }
  0xaa   :  { %v1889_v44 = vld [vmem:[%s2143_s3 + $0x48] sm:$0xff] }
  0xab   :  { %813 = vmatmul.bf16.vlgmr.msra.gmra.mxu3 %v2021_v54  ;;  %1675 = vmatmul.msk.bf16.vlgmr.msra.gmra.mxu2 %vm749_vm2, %v2029_v13  ;;  %v1901_v45 = vld [vmem:[%s2143_s3 + $0xa8] sm:$0xff] }
  0xac   :  { %861 = vmatpush.bf16.msrb.mxu2 %v1333_v59  ;;  %874 = vmatpush.bf16.msrb.mxu3 %v1461_v60  ;;  %v1497_v59 = vor.u32 %v1833_v49, %v1494_v50  ;;  %v1625_v60 = vor.u32 %v1865_v52, %v1622_v53  ;;  %v1899_v52 = vld [vmem:[%s2143_s3 + $0x98] sm:$0xff] }
  0xad   :  { %889 = vmatpush.bf16.msrb.mxu0 %v1557_v1  ;;  %911 = vmatpush.bf16.msra.mxu1 %v1369_v2  ;;  %v1606_v1 = vld [vmem:[#allocation2 + $0x298] sm:$0xf0]  ;;  %v1885_v2 = vld [vmem:[%s2143_s3 + $0x28] sm:$0xff] }
  0xae   :  { %v1609_v4 = vor.u32 %v1861_v0, %v1606_v1 }
  0xb0   :  { %862 = vmatpush.bf16.msrb.mxu2 %v1317_v7  ;;  %875 = vmatpush.bf16.msrb.mxu3 %v1445_v8  ;;  %v1857_v7 = vld [vmem:[#allocation2 + $0x26c] sm:$0xf]  ;;  %v1590_v8 = vld [vmem:[#allocation2 + $0x278] sm:$0xf0] }
  0xb1   :  { %890 = vmatpush.bf16.msrb.mxu0 %v1541_v17  ;;  %912 = vmatpush.bf16.msra.mxu1 %v1353_v18  ;;  %v1593_v10 = vor.u32 %v1857_v7, %v1590_v8  ;;  %v1449_v17 = vor.u32 %v1821_v11, %v1446_v14  ;;  %v1577_v18 = vor.u32 %v1853_v15, %v1574_v16  ;;  %v1904_v7 = vld [vmem:[%s2143_s3 + $0xc0] sm:$0xff] }
  0xb3   :  { %1676 = vmatmul.msk.bf16.vlgmr.msrb.gmra.mxu1 %vm749_vm2, %v2029_v13 }
  0xb4   :  { %863 = vmatpush.bf16.msrb.mxu2 %v1301_v22  ;;  %876 = vmatpush.bf16.msrb.mxu3 %v1429_v23  ;;  %v1558_v22 = vld [vmem:[#allocation2 + $0x238] sm:$0xf0]  ;;  %v1433_v23 = vor.u32 %v1817_v19, %v1430_v20 }
  0xb5   :  { %955 = vmatpush.bf16.msra.mxu0 %v1673_v21  ;;  %913 = vmatpush.bf16.msra.mxu1 %v1337_v29  ;;  %v1849_v21 = vld [vmem:[#allocation2 + $0x22c] sm:$0xf]  ;;  %v1884_v29 = vld [vmem:[%s2143_s3 + $0x20] sm:$0xff] }
  0xb6   :  { %891 = vmatmul.bf16.vlgmr.msrb.gmra.mxu0 %v2027_v12  ;;  %v1561_v24 = vor.u32 %v1849_v21, %v1558_v22 }
  0xb8   :  { %864 = vmatpush.bf16.msrb.mxu2 %v1285_v35  ;;  %877 = vmatpush.bf16.msrb.mxu3 %v1413_v36  ;;  %v1892_v35 = vld [vmem:[%s2143_s3 + $0x60] sm:$0xff]  ;;  %v1891_v36 = vld [vmem:[%s2143_s3 + $0x58] sm:$0xff] }
  0xb9   :  { %914 = vmatpush.bf16.msra.mxu1 %v1321_v40  ;;  %1174 = vmatpush.bf16.msrb.mxu0 %v1887_v46  ;;  %v2100_v40 = vld [vmem:[%s2144_s4 + $0x1] ss:$4 sm:$0xf] }
  0xba   :  { %v241_v43 = vperm.slane %v2100_v40, 0  ;;  %v242_v6 = vperm.slane %v2100_v40, 1 }
  0xbb   :  { %865 = vmatmul.bf16.vlgmr.msrb.gmra.mxu2 %v2021_v54  ;;  %878 = vmatmul.bf16.vlgmr.msrb.gmra.mxu3 %v2023_v55 }
  0xbc   :  { %922 = vmatpush.bf16.msra.mxu2 %v1529_v37  ;;  %935 = vmatpush.bf16.msra.mxu3 %v1657_v38  ;;  %v1903_v37 = vld [vmem:[%s2143_s3 + $0xb8] sm:$0xff]  ;;  %v1890_v38 = vld [vmem:[%s2143_s3 + $0x50] sm:$0xff] }
  0xbd   :  { %915 = vmatpush.bf16.msra.mxu1 %v1305_v51  ;;  %1175 = vmatpush.bf16.msrb.mxu0 %v1886_v56 }
  0xc0   :  { %923 = vmatpush.bf16.msra.mxu2 %v1513_v47  ;;  %936 = vmatpush.bf16.msra.mxu3 %v1641_v48  ;;  %v1888_v47 = vld [vmem:[%s2143_s3 + $0x40] sm:$0xff] }
  0xc1   :  { %916 = vmatpush.bf16.msra.mxu1 %v1289_v63  ;;  %1176 = vmatpush.bf16.msrb.mxu0 %v1885_v2  ;;  %v1900_v48 = vld [vmem:[%s2143_s3 + $0xa0] sm:$0xff]  ;;  %v1897_v63 = vld [vmem:[%s2143_s3 + $0x88] sm:$0xff] }
  0xc4   :  { %924 = vmatpush.bf16.msra.mxu2 %v1497_v59  ;;  %937 = vmatpush.bf16.msra.mxu3 %v1625_v60 }
  0xc5   :  { %917 = vmatmul.bf16.vlgmr.msra.gmra.mxu1 %v2021_v54  ;;  %v1414_v54 = vld [vmem:[#allocation2 + $0x118] sm:$0xf0]  ;;  %1177 = vmatpush.bf16.msrb.mxu0 %v1884_v29 }
  0xc6   :  { %1677 = vmatmul.msk.bf16.vlgmr.msra.gmra.mxu0 %vm749_vm2, %v2029_v13  ;;  %v1417_v13 = vor.u32 %v1813_v25, %v1414_v54 }
  0xc8   :  { %925 = vmatpush.bf16.msra.mxu2 %v1481_v3  ;;  %938 = vmatpush.bf16.msra.mxu3 %v1609_v4  ;;  %v1896_v3 = vld [vmem:[%s2143_s3 + $0x80] sm:$0xff] }
  0xc9   :  { %1178 = vmatpush.bf16.msrb.mxu0 %v1883_v30 }
  0xcc   :  { %926 = vmatpush.bf16.msra.mxu2 %v1465_v9  ;;  %939 = vmatpush.bf16.msra.mxu3 %v1593_v10 }
  0xcd   :  { %1179 = vmatpush.bf16.msrb.mxu0 %v1882_v31 }
  0xd0   :  { %927 = vmatpush.bf16.msra.mxu2 %v1449_v17  ;;  %940 = vmatpush.bf16.msra.mxu3 %v1577_v18 }
  0xd4   :  { %928 = vmatpush.bf16.msra.mxu2 %v1433_v23  ;;  %941 = vmatpush.bf16.msra.mxu3 %v1561_v24  ;;  %v243_v24 = vperm.slane %v2100_v40, 2 }
  0xd8   :  { %929 = vmatpush.bf16.msra.mxu2 %v1417_v13  ;;  %942 = vmatpush.bf16.msra.mxu3 %v1545_v28 }
  0xdb   :  { %930 = vmatmul.bf16.vlgmr.msra.gmra.mxu2 %v2023_v55  ;;  %943 = vmatmul.bf16.vlgmr.msra.gmra.mxu3 %v2027_v12  ;;  %v1895_v55 = vld [vmem:[%s2143_s3 + $0x78] sm:$0xff]  ;;  %v1881_v12 = vld [vmem:[%s2143_s3 + $0x8] sm:$0xff] }
  0xdc   :  { %1187 = vmatpush.bf16.msrb.mxu1 %v1895_v55  ;;  %1180 = vmatpush.bf16.msrb.mxu0 %v1881_v12 }
  0xdd   :  { %1200 = vmatpush.bf16.msrb.mxu2 %v1903_v37  ;;  %1220 = vmatpush.bf16.msrb.mxu3 %v1904_v7 }
  0xe0   :  { %1188 = vmatpush.bf16.msrb.mxu1 %v1894_v32  ;;  %1181 = vmatpush.bf16.msrb.mxu0 %v1880_v33 }
  0xe1   :  { %1201 = vmatpush.bf16.msrb.mxu2 %v1902_v39 }
  0xe4   :  { %1189 = vmatpush.bf16.msrb.mxu1 %v1893_v34 }
  0xe5   :  { %1202 = vmatpush.bf16.msrb.mxu2 %v1901_v45 }
  0xe8   :  { %1190 = vmatpush.bf16.msrb.mxu1 %v1892_v35  ;;  %v244_v35 = vperm.slane %v2100_v40, 3  ;;  %v1909_v40 = vld [vmem:[%s2144_s4 + $0x2] ss:$0 sm:$0xff]  ;;  %s1971_s4 = smov [#allocation5]  }
  0xe9   :  { %1203 = vmatpush.bf16.msrb.mxu2 %v1900_v48  ;;  %s1257_s2 = sshll.u32 %s1971_s4, 4  ;;  %s1258_s2 = int_to_ptr.vmem [resolvable:$true] %s1257_s2 }
  0xec   :  { %1191 = vmatpush.bf16.msrb.mxu1 %v1891_v36 }
  0xed   :  { %1204 = vmatpush.bf16.msrb.mxu2 %v1899_v52 }
  0xf0   :  { %1192 = vmatpush.bf16.msrb.mxu1 %v1890_v38 }
  0xf1   :  { %1205 = vmatpush.bf16.msrb.mxu2 %v1898_v58 }
  0xf4   :  { %1193 = vmatpush.bf16.msrb.mxu1 %v1889_v44 }
  0xf5   :  { %1206 = vmatpush.bf16.msrb.mxu2 %v1897_v63 }
  0xf8   :  { %1194 = vmatpush.bf16.msrb.mxu1 %v1888_v47 }
  0xf9   :  { %1207 = vmatpush.bf16.msrb.mxu2 %v1896_v3 }
 0x110   :  { %v762_v41 = vpop.f32.mrf.mxu0  ;;  %v775_v42 = vpop.f32.mrf.mxu1 }
 0x111   :  { %v763_v46 = vadd.f32 %v762_v41, %v241_v43 }
 0x113   :  { %v776_v51 = vadd.f32 %v775_v42, %v763_v46 }
 0x118   :  { %v764_v49 = vpop.f32.mrf.mxu0  ;;  %v777_v50 = vpop.f32.mrf.mxu1 }
 0x11e   :  { %v788_v53 = vpop.f32.mrf.mxu2  ;;  %v801_v56 = vpop.f32.mrf.mxu3 }
 0x11f   :  { %v789_v57 = vadd.f32 %v788_v53, %v776_v51 }
 0x120   :  { %v827_v60 = vpop.f32.mrf.mxu0  ;;  %v840_v61 = vpop.f32.mrf.mxu1 }
 0x121   :  { %v802_v59 = vadd.f32 %v801_v56, %v789_v57 }
 0x123   :  { %v961_v62 = vmax.f32 %v802_v59, 0.0 }
 0x125   :  { %v965_v0 = vpack.c.bf16 %v961_v62, %v961_v62 }
 0x126   :  { %v790_v1 = vpop.f32.mrf.mxu2  ;;  %v803_v2 = vpop.f32.mrf.mxu3 }
 0x127   :  { %1182 = vmatmul.bf16.vlgmr.msrb.gmra.mxu0 %v965_v0  ;;  %v1226_v1 = vlaneseq }
 0x128   :  { %v829_v4 = vpop.f32.mrf.mxu0  ;;  %v842_v5 = vpop.f32.mrf.mxu1 }
 0x129   :  { %v1227_v4 = vand.u32 127, %v1226_v1 }
 0x12b   :  { %vm1228_vm5 = vcmp.lt.s32.totalorder %v1227_v4, 2 }
 0x12e   :  { %v814_v8 = vpop.f32.mrf.mxu3  ;;  %v853_v9 = vpop.f32.mrf.mxu2 }
 0x12f   :  { %v815_v10 = vadd.f32 %v814_v8, %v242_v6 }
 0x130   :  { %v905_v15 = vpop.f32.mrf.mxu1 }
 0x131   :  { %v828_v11 = vadd.f32 %v827_v60, %v815_v10 }
 0x133   :  { %v892_v14 = vpop.f32.mrf.mxu0  ;;  %v841_v16 = vadd.f32 %v840_v61, %v828_v11 }
 0x135   :  { %v854_v17 = vadd.f32 %v853_v9, %v841_v16 }
 0x136   :  { %v816_v18 = vpop.f32.mrf.mxu3  ;;  %v855_v19 = vpop.f32.mrf.mxu2 }
 0x137   :  { %v962_v20 = vmax.f32 %v854_v17, 0.0 }
 0x138   :  { %v907_v23 = vpop.f32.mrf.mxu1 }
 0x139   :  { %v966_v21 = vpack.c.bf16 %v962_v20, %v962_v20 }
 0x13b   :  { %v894_v22 = vpop.f32.mrf.mxu0  ;;  %1195 = vmatmul.bf16.vlgmr.msrb.gmra.mxu1 %v966_v21 }
 0x13e   :  { %v866_v25 = vpop.f32.mrf.mxu2  ;;  %v879_v54 = vpop.f32.mrf.mxu3 }
 0x13f   :  { %v867_v26 = vadd.f32 %v866_v25, %v243_v24 }
 0x141   :  { %v880_v27 = vadd.f32 %v879_v54, %v867_v26 }
 0x142   :  { %v918_v28 = vpop.f32.mrf.mxu1 }
 0x143   :  { %v893_v13 = vadd.f32 %v892_v14, %v880_v27  ;;  %v957_v29 = vpop.f32.mrf.mxu0  ;;  %v919_v36 = vadd.f32 %v918_v28, %v244_v35 }
 0x145   :  { %v906_v30 = vadd.f32 %v905_v15, %v893_v13 }
 0x146   :  { %v868_v31 = vpop.f32.mrf.mxu2  ;;  %v881_v55 = vpop.f32.mrf.mxu3 }
 0x147   :  { %v963_v12 = vmax.f32 %v906_v30, 0.0 }
 0x149   :  { %v967_v32 = vpack.c.bf16 %v963_v12, %v963_v12 }
 0x14a   :  { %v920_v33 = vpop.f32.mrf.mxu1 }
 0x14b   :  { %v959_v34 = vpop.f32.mrf.mxu0  ;;  %1208 = vmatmul.bf16.vlgmr.msrb.gmra.mxu2 %v967_v32 }
 0x15e   :  { %v931_v37 = vpop.f32.mrf.mxu2  ;;  %v944_v38 = vpop.f32.mrf.mxu3 }
 0x15f   :  { %v932_v39 = vadd.f32 %v931_v37, %v919_v36 }
 0x161   :  { %v945_v41 = vadd.f32 %v944_v38, %v932_v39 }
 0x163   :  { %v958_v42 = vadd.f32 %v957_v29, %v945_v41 }
 0x165   :  { %v964_v43 = vmax.f32 %v958_v42, 0.0 }
 0x166   :  { %v933_v44 = vpop.f32.mrf.mxu2  ;;  %v946_v45 = vpop.f32.mrf.mxu3 }
 0x167   :  { %v968_v46 = vpack.c.bf16 %v964_v43, %v964_v43 }
 0x169   :  { %1778 = vmatmul.msk.bf16.vlgmr.msrb.gmra.mxu3 %vm749_vm2, %v968_v46 }
 0x1a4   :  { %v1183_v47 = vpop.f32.mrf.mxu0 }
 0x1a5   :  { %v1184_v53 = vadd.f32 %v1909_v40, %v1183_v47 }
 0x1ac   :  { %v1185_v48 = vpop.f32.mrf.mxu0 }
 0x1b8   :  { %v1196_v49 = vpop.f32.mrf.mxu1 }
 0x1b9   :  { %v1197_v56 = vadd.f32 %v1196_v49, %v1184_v53 }
 0x1c0   :  { %v1198_v50 = vpop.f32.mrf.mxu1 }
 0x1ce   :  { %v1209_v51 = vpop.f32.mrf.mxu2 }
 0x1cf   :  { %v1210_v57 = vadd.f32 %v1209_v51, %v1197_v56 }
 0x1d6   :  { %v1211_v52 = vpop.f32.mrf.mxu2 }
 0x1ec   :  { %v1222_v58 = vpop.f32.mrf.mxu3 }
 0x1ed   :  { %v1223_v59 = vadd.f32 %v1222_v58, %v1210_v57 }
 0x1ef   :  { %v1779_v60 = vmul.f32 -1.442695, %v1223_v59 }
 0x1f1   :  { %1910 = vpow2.f32 %v1779_v60 }
 0x1f4   :  { %v1224_v61 = vpop.f32.mrf.mxu3 }
 0x1f7   :  { %v1911_v62 = vpop.eup %1910 }
 0x1f8   :  { %v1233_v63 = vadd.f32 1.0, %v1911_v62 }
 0x1fa   :  { %1912 = vrcp.f32 %v1233_v63  ;;  %v1245_v5 = vand.u32 2147483648, %v1233_v63  ;;  %v1243_v7 = vand.u32 2147483647, %v1233_v63  ;;  %vm1239_vm4 = vweird.f32 %v1233_v63 }
 0x1fb   :  { %1914 = vtanh.f32 %v1223_v59 }
 0x1fc   :  { %v1246_v9 = vor.u32 1.1754944e-38, %v1245_v5  ;;  %vm1244_vm7 = vcmp.eq.f32.partialorder %v1243_v7, 8.507059e+37 }
 0x200   :  { %v1913_v0 = vpop.eup %1912 }
 0x201   :  { %v1235_v2 = vmul.f32 %v1913_v0, %v1233_v63  ;;  %vm1240_vm3 = vweird.f32 %v1913_v0  ;;  %v1915_v11 = vpop.eup %1914 }
 0x202   :  { %vm1241_vm6 = vmor %vm1239_vm4, %vm1240_vm3 }
 0x203   :  { %v1236_v3 = vsub.f32 1.0, %v1235_v2 }
 0x205   :  { %v1237_v6 = vmul.f32 %v1913_v0, %v1236_v3 }
 0x207   :  { %v1238_v8 = vadd.f32 %v1913_v0, %v1237_v6 }
 0x209   :  { %v1242_v10 = vsel %vm1241_vm6, %v1913_v0, %v1238_v8 }
 0x20a   :  { %v1247_v14 = vsel %vm1244_vm7, %v1246_v9, %v1242_v10 }
 0x20b   :  { %v1249_v15 = vsel %vm1228_vm5, %v1915_v11, %v1247_v14 }
 0x20c   :  { %1251 = vst.msk [vmem:[#allocation5] sm:$0x3] %vm1250_vm8, %v1249_v15 }
 0x20d   :  { %1262 = dma.vmem_to_hbm [thread:$0]  %s1258_s2, 32, %s1260_s30, [#allocation4]  }
 0x20e   :  { %1966 = dma.done.wait [#allocation4], 32  }
 0x20f   :  { %1967 = vsyncadd [#allocation4], 4294967264 }
 0x210   :  { %1267 = vsyncpa [#allocation3], 1 }
 0x211   :  { %1268 = vsyncpa [#allocation4], 1 }

</bundles_post_ra>
